<compile_context>
chip_gen: v7x
topology: tpu7x:2x2x1
jax: 0.10.0
libtpu: 0.0.40
codegen_flags: <defaults>
</compile_context>

<pallas_src>
import functools
import math

import jax
import jax.numpy as jnp
from jax.experimental import pallas as pl
from jax.experimental.pallas import tpu as pltpu


def _round_up(n, m):
    return ((n + m - 1) // m) * m


def _tpu_tile_config():
    """Return (m_target, vmem_budget_bytes, vmem_limit_bytes) per TPU generation."""
    try:
        kind = jax.devices()[0].device_kind.lower()
    except Exception:
        kind = ""
    mib = 1024 * 1024
    if ("v5e" in kind) or ("v5 lite" in kind) or ("v5lite" in kind):
        # 128x128 MXU fills at M=128; raise the 16 MiB default scoped VMEM limit.
        return 128, 32 * mib, 64 * mib
    if "v7" in kind:
        # 64 MiB/TC physical VMEM -> tighter working-set budget, explicit limit.
        return 256, 28 * mib, 48 * mib
    if "v6" in kind:
        # 128 MiB VMEM, 256x256 MXU -> bigger M target and budget.
        return 256, 56 * mib, 96 * mib
    # Unknown generation: conservative.
    return 128, 32 * mib, 64 * mib


def _pick_block_b(B, Tp, Cp, Ep, HWp, m_target, vmem_budget):
    """Pick the batch-tile size Bb (grid = ceil(B/Bb))."""

    def vmem_bytes(bb):
        io = bb * Tp * (Cp + Ep) * 2 + bb * Ep * HWp * 2          # bf16 inputs
        io += bb * Tp * Cp * 4 + bb * Tp * HWp * 2                # f32 out + bf16 attn
        w = 2 * Cp * Ep * 2 + (Ep + Cp) * 4                       # weights + biases
        live = bb * Tp * (2 * HWp * 4 + Ep * 4 + Cp * 4)          # f32 intermediates
        return 2 * (io + w) + live                                # double-buffered I/O

    bb = max(1, m_target // max(1, Tp))
    bb = min(bb, B)
    if B >= 2:
        bb = min(bb, -(-B // 2))          # keep >=2 grid steps (dual-TC sharding)
    while bb > 1 and vmem_bytes(bb) > vmem_budget:
        bb -= 1
    # Prefer a tile that divides B (no padded batch rows, balanced grid), as long
    # as it does not shrink the tile by more than ~2x.
    div = bb
    while div > 1 and B % div != 0:
        div -= 1
    if div >= max(1, bb // 2):
        bb = div
    return bb


def _attention_kernel(x_ref, we_ref, y_ref,
                      win_ref, bin_ref, wout_ref, bout_ref,
                      out_ref, attn_ref, *, n_pad, ctx_scale):
    """One grid step processes a tile of Bb batch items.

    x_ref   : (Bb, Tp, Cp)   bf16
    we_ref  : (Bb, Tp, Ep)   bf16
    y_ref   : (Bb, Ep, HWp)  bf16   (lane-dense spatial axis, zero-padded)
    win_ref : (Cp, Ep) bf16, bin_ref : (1, Ep) f32
    wout_ref: (Ep, Cp) bf16, bout_ref: (1, Cp) f32
    out_ref : (Bb, Tp, Cp)   f32
    attn_ref: (Bb, Tp, HWp)  bf16
    """
    Bb, Tp, Cp = x_ref.shape
    Ep = we_ref.shape[-1]
    sqrt_half = jnp.float32(math.sqrt(0.5))

    # ---- in_projection: one big (Bb*Tp, Cp) x (Cp, Ep) MXU matmul ---------------
    x2d = x_ref[...].reshape(Bb * Tp, Cp)                        # bf16
    we2d = we_ref[...].reshape(Bb * Tp, Ep)                      # bf16
    h = jnp.dot(x2d, win_ref[...], preferred_element_type=jnp.float32)
    h = (h + bin_ref[...] + we2d.astype(jnp.float32)) * sqrt_half
    h3 = h.reshape(Bb, Tp, Ep).astype(jnp.bfloat16)

    # ---- attention scores: batched bmm, canonical (M,K)x(K,N) -------------------
    y = y_ref[...]                                               # (Bb, Ep, HWp) bf16
    scores = jnp.einsum("bte,bev->btv", h3, y,
                        preferred_element_type=jnp.float32)      # (Bb, Tp, HWp) f32

    # ---- numerically stable softmax; padded columns handled via the denominator.
    # Padded y columns are exactly zero -> their scores are exactly 0 and each adds
    # exp(-m) to the row sum; subtract that instead of masking the whole tile.
    m = jnp.max(scores, axis=-1, keepdims=True)
    p = jnp.exp(scores - m)
    denom = jnp.sum(p, axis=-1, keepdims=True)
    if n_pad:
        denom = denom - jnp.float32(n_pad) * jnp.exp(-m)
        denom = jnp.maximum(denom, jnp.float32(1e-30))           # safety floor
    attn = p * pl.reciprocal(denom, approx=True)
    attn_bf = attn.astype(jnp.bfloat16)
    attn_ref[...] = attn_bf                                      # bf16, lane-dense

    # ---- context: attn @ y^T, contracting the minor axis of both operands -------
    # (no duplicated / pre-transposed y input; padded attn cols hit zero y cols)
    ctx = jnp.einsum("btv,bev->bte", attn_bf, y,
                     preferred_element_type=jnp.float32)         # (Bb, Tp, Ep) f32
    ctx = ctx * jnp.float32(ctx_scale)

    # ---- out_projection + residual: one big matmul again ------------------------
    ctx2d = ctx.reshape(Bb * Tp, Ep).astype(jnp.bfloat16)
    o = jnp.dot(ctx2d, wout_ref[...], preferred_element_type=jnp.float32)
    o = (o + bout_ref[...] + x2d.astype(jnp.float32)) * sqrt_half
    out_ref[...] = o.reshape(Bb, Tp, Cp)


def attention_layer_forward(x, word_embed, conv_feats,
                            w_in, b_in, w_out, b_out, block_b=None):
    """x: (B,T,C), word_embed: (B,T,E), conv_feats: (B,E,H,W).

    w_in: (E, C)  [PyTorch Linear weight layout], b_in: (E,)
    w_out: (C, E),                                b_out: (C,)
    """
    B, T, C = x.shape
    E = word_embed.shape[-1]
    _, E2, H, W = conv_feats.shape
    assert E2 == E
    HW = H * W

    Tp = _round_up(T, 8)             # sublane alignment
    HWp = _round_up(HW, 128)         # lane-dense scores / attn path
    Cp = _round_up(C, 128)           # lane-dense out store + MXU operands
    Ep = _round_up(E, 128)

    m_target, vmem_budget, vmem_limit = _tpu_tile_config()
    if block_b is None:
        block_b = _pick_block_b(B, Tp, Cp, Ep, HWp, m_target, vmem_budget)
    Bb = max(1, min(block_b, B))
    Bp = _round_up(B, Bb)
    grid = (Bp // Bb,)

    f32, bf16 = jnp.float32, jnp.bfloat16

    # Pad + flatten directly in bf16 (no intermediate f32 padded copies).
    xp = jnp.zeros((Bp, Tp, Cp), bf16).at[:B, :T, :C].set(x.astype(bf16))
    wep = jnp.zeros((Bp, Tp, Ep), bf16).at[:B, :T, :E].set(word_embed.astype(bf16))
    y = conv_feats.reshape(B, E, HW).astype(bf16)
    yp = jnp.zeros((Bp, Ep, HWp), bf16).at[:B, :E, :HW].set(y)

    w_in_p = jnp.zeros((Cp, Ep), bf16).at[:C, :E].set(jnp.asarray(w_in, f32).T.astype(bf16))
    w_out_p = jnp.zeros((Ep, Cp), bf16).at[:E, :C].set(jnp.asarray(w_out, f32).T.astype(bf16))
    b_in_p = jnp.zeros((1, Ep), f32).at[0, :E].set(jnp.asarray(b_in, f32))
    b_out_p = jnp.zeros((1, Cp), f32).at[0, :C].set(jnp.asarray(b_out, f32))

    kernel = functools.partial(_attention_kernel, n_pad=HWp - HW,
                               ctx_scale=float(HW * math.sqrt(1.0 / HW)))

    flops = 2 * Bp * Tp * (Cp * Ep + Ep * HWp + HWp * Ep + Ep * Cp)
    transcendentals = Bp * Tp * (HWp + 1)
    bytes_accessed = (2 * (xp.size + wep.size + yp.size + w_in_p.size + w_out_p.size)
                      + 4 * (b_in_p.size + b_out_p.size)
                      + 4 * (Bp * Tp * Cp)        # out (f32)
                      + 2 * (Bp * Tp * HWp))      # attn (bf16)

    grid_spec = pltpu.PrefetchScalarGridSpec(
        num_scalar_prefetch=0,
        grid=grid,
        in_specs=[
            pl.BlockSpec((Bb, Tp, Cp), lambda b: (b, 0, 0)),     # x
            pl.BlockSpec((Bb, Tp, Ep), lambda b: (b, 0, 0)),     # word_embed
            pl.BlockSpec((Bb, Ep, HWp), lambda b: (b, 0, 0)),    # y (single copy)
            pl.BlockSpec((Cp, Ep), lambda b: (0, 0)),            # W_in^T
            pl.BlockSpec((1, Ep), lambda b: (0, 0)),             # b_in
            pl.BlockSpec((Ep, Cp), lambda b: (0, 0)),            # W_out^T
            pl.BlockSpec((1, Cp), lambda b: (0, 0)),             # b_out
        ],
        out_specs=[
            pl.BlockSpec((Bb, Tp, Cp), lambda b: (b, 0, 0)),     # out (f32)
            pl.BlockSpec((Bb, Tp, HWp), lambda b: (b, 0, 0)),    # attn (bf16)
        ],
    )

    out_p, attn_p = pl.pallas_call(
        kernel,
        out_shape=(
            jax.ShapeDtypeStruct((Bp, Tp, Cp), jnp.float32),
            jax.ShapeDtypeStruct((Bp, Tp, HWp), jnp.bfloat16),
        ),
        grid_spec=grid_spec,
        compiler_params=pltpu.CompilerParams(
            dimension_semantics=("parallel",),
            vmem_limit_bytes=int(vmem_limit)),
        cost_estimate=pl.CostEstimate(
            flops=flops, transcendentals=transcendentals,
            bytes_accessed=bytes_accessed),
    )(xp, wep, yp, w_in_p, b_in_p, w_out_p, b_out_p)

    # Strip batch / seq / channel / spatial padding; restore f32 attn for the API.
    out = out_p[:B, :T, :C]
    attn = attn_p[:B, :T, :HW].astype(jnp.float32)
    return out, attn


def init_params(key, conv_channels, embed_dim):
    # Matches Linear() helper: weight ~ N(0, sqrt(1/in_features)), bias = 0.
    # weight_norm at init is an identity reparameterization (g = ||v||), so the
    # effective weight equals the freshly initialized one.
    k1, k2 = jax.random.split(key)
    w_in = jax.random.normal(k1, (embed_dim, conv_channels), jnp.float32) \
        * math.sqrt(1.0 / conv_channels)
    b_in = jnp.zeros((embed_dim,), jnp.float32)
    w_out = jax.random.normal(k2, (conv_channels, embed_dim), jnp.float32) \
        * math.sqrt(1.0 / embed_dim)
    b_out = jnp.zeros((conv_channels,), jnp.float32)
    return w_in, b_in, w_out, b_out


if __name__ == "__main__":
    B, T, C, E, H, W = 2, 8, 4, 32, 4, 4

    key = jax.random.PRNGKey(0)
    kx, kw, kf, kp = jax.random.split(key, 4)

    x = jax.random.normal(kx, (B, T, C), jnp.float32)
    word_embed = jax.random.normal(kw, (B, T, E), jnp.float32)
    conv_feats = jax.random.normal(kf, (B, E, H, W), jnp.float32)

    w_in, b_in, w_out, b_out = init_params(kp, C, E)

    out, attn = attention_layer_forward(x, word_embed, conv_feats,
                                        w_in, b_in, w_out, b_out)
    jax.block_until_ready((out, attn))
    assert out.shape == (B, T, C) and attn.shape == (B, T, H * W)

    # Pure-JAX reference of the same math, applying the same bf16 quantization at
    # the MXU boundaries (f32 accumulation everywhere), so tolerances stay tight.
    def ref(x, we, cf, w_in, b_in, w_out, b_out):
        bf16, f32 = jnp.bfloat16, jnp.float32
        xq = x.astype(bf16)
        weq = we.astype(bf16)
        yq = cf.reshape(B, E, H * W).astype(bf16)
        wiq = jnp.asarray(w_in, f32).T.astype(bf16)
        woq = jnp.asarray(w_out, f32).T.astype(bf16)
        h = jnp.einsum("btc,ce->bte", xq, wiq, preferred_element_type=f32)
        h = (h + b_in + weq.astype(f32)) * math.sqrt(0.5)
        s = jnp.einsum("bte,bev->btv", h.astype(bf16), yq,
                       preferred_element_type=f32)
        a = jax.nn.softmax(s, axis=-1)
        ctx = jnp.einsum("btv,bve->bte", a.astype(bf16),
                         jnp.transpose(yq, (0, 2, 1)),
                         preferred_element_type=f32)
        ctx = ctx * (H * W * math.sqrt(1.0 / (H * W)))
        o = jnp.einsum("bte,ec->btc", ctx.astype(bf16), woq,
                       preferred_element_type=f32)
        o = (o + b_out + xq.astype(f32)) * math.sqrt(0.5)
        return o, a

    out_exp, attn_exp = ref(x, word_embed, conv_feats, w_in, b_in, w_out, b_out)

    assert jnp.all(jnp.isfinite(out)) and jnp.all(jnp.isfinite(attn))
    assert jnp.allclose(attn, attn_exp, atol=1e-2, rtol=1e-2)
    assert jnp.allclose(out, out_exp, atol=2e-2, rtol=2e-2)

    print("KERNEL_OK")
</pallas_src>

<mosaic_0001>
module attributes {stable_mosaic.version = 11 : i64} {
  func.func @_attention_kernel(%arg0: i32, %arg1: memref<1x8x128xbf16, #tpu.memory_space<vmem>>, %arg2: memref<1x8x128xbf16, #tpu.memory_space<vmem>>, %arg3: memref<1x128x128xbf16, #tpu.memory_space<vmem>>, %arg4: memref<128x128xbf16, #tpu.memory_space<vmem>>, %arg5: memref<1x128xf32, #tpu.memory_space<vmem>>, %arg6: memref<128x128xbf16, #tpu.memory_space<vmem>>, %arg7: memref<1x128xf32, #tpu.memory_space<vmem>>, %arg8: memref<1x8x128xf32, #tpu.memory_space<vmem>>, %arg9: memref<1x8x128xbf16, #tpu.memory_space<vmem>>) attributes {dimension_semantics = [#tpu.dimension_semantics<parallel>], iteration_bounds = array<i64: 2>, scalar_prefetch = 0 : i64, scratch_operands = 0 : i64, tpu.core_type = #tpu.core_type<tc>, window_params = [{transform_indices = @transform_0, window_bounds = array<i64: 1, 8, 128>}, {transform_indices = @transform_1, window_bounds = array<i64: 1, 8, 128>}, {transform_indices = @transform_2, window_bounds = array<i64: 1, 128, 128>}, {pipeline_mode = #tpu.pipeline_mode<synchronous>, transform_indices = @transform_3, window_bounds = array<i64: 128, 128>}, {pipeline_mode = #tpu.pipeline_mode<synchronous>, transform_indices = @transform_4, window_bounds = array<i64: 1, 128>}, {pipeline_mode = #tpu.pipeline_mode<synchronous>, transform_indices = @transform_5, window_bounds = array<i64: 128, 128>}, {pipeline_mode = #tpu.pipeline_mode<synchronous>, transform_indices = @transform_6, window_bounds = array<i64: 1, 128>}, {transform_indices = @transform_7, window_bounds = array<i64: 1, 8, 128>}, {transform_indices = @transform_8, window_bounds = array<i64: 1, 8, 128>}]} {
    %c0 = arith.constant 0 : index
    %c0_0 = arith.constant 0 : index
    %c0_1 = arith.constant 0 : index
    %0 = vector.load %arg1[%c0, %c0_0, %c0_1] : memref<1x8x128xbf16, #tpu.memory_space<vmem>>, vector<1x8x128xbf16>
    %1 = vector.shape_cast %0 : vector<1x8x128xbf16> to vector<8x128xbf16>
    %c0_2 = arith.constant 0 : index
    %c0_3 = arith.constant 0 : index
    %c0_4 = arith.constant 0 : index
    %2 = vector.load %arg2[%c0_2, %c0_3, %c0_4] : memref<1x8x128xbf16, #tpu.memory_space<vmem>>, vector<1x8x128xbf16>
    %3 = vector.shape_cast %2 : vector<1x8x128xbf16> to vector<8x128xbf16>
    %c0_5 = arith.constant 0 : index
    %c0_6 = arith.constant 0 : index
    %4 = vector.load %arg4[%c0_5, %c0_6] : memref<128x128xbf16, #tpu.memory_space<vmem>>, vector<128x128xbf16>
    %cst = arith.constant dense<0.000000e+00> : vector<8x128xf32>
    %5 = tpu.matmul %1, %4, %cst {dimension_numbers = #tpu.dot_dimension_numbers<[1], [0], [0], [1], [0, 0, 1, 1], [], []>} : vector<8x128xbf16>, vector<128x128xbf16>, vector<8x128xf32> -> vector<8x128xf32>
    %c0_7 = arith.constant 0 : index
    %c0_8 = arith.constant 0 : index
    %6 = vector.load %arg5[%c0_7, %c0_8] : memref<1x128xf32, #tpu.memory_space<vmem>>, vector<1x128xf32>
    %7 = vector.broadcast %6 : vector<1x128xf32> to vector<8x128xf32>
    %8 = arith.addf %5, %7 : vector<8x128xf32>
    %9 = arith.extf %3 : vector<8x128xbf16> to vector<8x128xf32>
    %10 = arith.addf %8, %9 : vector<8x128xf32>
    %cst_9 = arith.constant 0.707106769 : f32
    %11 = vector.broadcast %cst_9 : f32 to vector<8x128xf32>
    %12 = arith.mulf %10, %11 : vector<8x128xf32>
    %13 = vector.shape_cast %12 : vector<8x128xf32> to vector<1x8x128xf32>
    %14 = arith.truncf %13 : vector<1x8x128xf32> to vector<1x8x128xbf16>
    %c0_10 = arith.constant 0 : index
    %c0_11 = arith.constant 0 : index
    %c0_12 = arith.constant 0 : index
    %15 = vector.load %arg3[%c0_10, %c0_11, %c0_12] : memref<1x128x128xbf16, #tpu.memory_space<vmem>>, vector<1x128x128xbf16>
    "tpu.trace_start"() <{level = 10 : i32, message = "bte,bev->btv"}> : () -> ()
    %cst_13 = arith.constant dense<0.000000e+00> : vector<1x8x128xf32>
    %16 = tpu.matmul %14, %15, %cst_13 {dimension_numbers = #tpu.dot_dimension_numbers<[2], [1], [1], [2], [0, 0, 0, 1, 1, 2], [0], [0]>} : vector<1x8x128xbf16>, vector<1x128x128xbf16>, vector<1x8x128xf32> -> vector<1x8x128xf32>
    "tpu.trace_stop"() : () -> ()
    %cst_14 = arith.constant dense<0xFF800000> : vector<1x8xf32>
    %17 = vector.multi_reduction <maximumf>, %16, %cst_14 [2] : vector<1x8x128xf32> to vector<1x8xf32>
    %18 = vector.shape_cast %17 : vector<1x8xf32> to vector<1x8x1xf32>
    %19 = vector.broadcast %18 : vector<1x8x1xf32> to vector<1x8x128xf32>
    %20 = arith.subf %16, %19 : vector<1x8x128xf32>
    %21 = math.exp %20 : vector<1x8x128xf32>
    %cst_15 = arith.constant dense<0.000000e+00> : vector<1x8xf32>
    %22 = vector.multi_reduction <add>, %21, %cst_15 [2] : vector<1x8x128xf32> to vector<1x8xf32>
    %23 = vector.shape_cast %22 : vector<1x8xf32> to vector<1x8x1xf32>
    %cst_16 = arith.constant 0.000000e+00 : f32
    %24 = vector.broadcast %cst_16 : f32 to vector<1x8x1xf32>
    %25 = arith.subf %24, %18 : vector<1x8x1xf32>
    %26 = math.exp %25 : vector<1x8x1xf32>
    %cst_17 = arith.constant 1.120000e+02 : f32
    %27 = vector.broadcast %cst_17 : f32 to vector<1x8x1xf32>
    %28 = arith.mulf %27, %26 : vector<1x8x1xf32>
    %29 = arith.subf %23, %28 : vector<1x8x1xf32>
    %cst_18 = arith.constant 1.000000e-30 : f32
    %30 = vector.broadcast %cst_18 : f32 to vector<1x8x1xf32>
    %31 = arith.maximumf %29, %30 : vector<1x8x1xf32>
    %32 = tpu.reciprocal %31 {approx = true} : vector<1x8x1xf32> -> vector<1x8x1xf32>
    %33 = vector.broadcast %32 : vector<1x8x1xf32> to vector<1x8x128xf32>
    %34 = arith.mulf %21, %33 : vector<1x8x128xf32>
    %35 = arith.truncf %34 : vector<1x8x128xf32> to vector<1x8x128xbf16>
    %c0_19 = arith.constant 0 : index
    %c0_20 = arith.constant 0 : index
    %c0_21 = arith.constant 0 : index
    %36 = vector.load %arg9[%c0_19, %c0_20, %c0_21] : memref<1x8x128xbf16, #tpu.memory_space<vmem>>, vector<1x8x128xbf16>
    tpu.vector_store %arg9[%c0_19, %c0_20, %c0_21], %35 {strides = array<i32>} : memref<1x8x128xbf16, #tpu.memory_space<vmem>>, vector<1x8x128xbf16>,
    "tpu.trace_start"() <{level = 10 : i32, message = "btv,bev->bte"}> : () -> ()
    %cst_22 = arith.constant dense<0.000000e+00> : vector<1x8x128xf32>
    %37 = tpu.matmul %35, %15, %cst_22 {dimension_numbers = #tpu.dot_dimension_numbers<[2], [2], [1], [1], [0, 0, 0, 1, 1, 1], [0], [0]>} : vector<1x8x128xbf16>, vector<1x128x128xbf16>, vector<1x8x128xf32> -> vector<1x8x128xf32>
    "tpu.trace_stop"() : () -> ()
    %cst_23 = arith.constant 4.000000e+00 : f32
    %38 = vector.broadcast %cst_23 : f32 to vector<1x8x128xf32>
    %39 = arith.mulf %37, %38 : vector<1x8x128xf32>
    %40 = vector.shape_cast %39 : vector<1x8x128xf32> to vector<8x128xf32>
    %41 = arith.truncf %40 : vector<8x128xf32> to vector<8x128xbf16>
    %c0_24 = arith.constant 0 : index
    %c0_25 = arith.constant 0 : index
    %42 = vector.load %arg6[%c0_24, %c0_25] : memref<128x128xbf16, #tpu.memory_space<vmem>>, vector<128x128xbf16>
    %cst_26 = arith.constant dense<0.000000e+00> : vector<8x128xf32>
    %43 = tpu.matmul %41, %42, %cst_26 {dimension_numbers = #tpu.dot_dimension_numbers<[1], [0], [0], [1], [0, 0, 1, 1], [], []>} : vector<8x128xbf16>, vector<128x128xbf16>, vector<8x128xf32> -> vector<8x128xf32>
    %c0_27 = arith.constant 0 : index
    %c0_28 = arith.constant 0 : index
    %44 = vector.load %arg7[%c0_27, %c0_28] : memref<1x128xf32, #tpu.memory_space<vmem>>, vector<1x128xf32>
    %45 = vector.broadcast %44 : vector<1x128xf32> to vector<8x128xf32>
    %46 = arith.addf %43, %45 : vector<8x128xf32>
    %47 = arith.extf %1 : vector<8x128xbf16> to vector<8x128xf32>
    %48 = arith.addf %46, %47 : vector<8x128xf32>
    %cst_29 = arith.constant 0.707106769 : f32
    %49 = vector.broadcast %cst_29 : f32 to vector<8x128xf32>
    %50 = arith.mulf %48, %49 : vector<8x128xf32>
    %51 = vector.shape_cast %50 : vector<8x128xf32> to vector<1x8x128xf32>
    %c0_30 = arith.constant 0 : index
    %c0_31 = arith.constant 0 : index
    %c0_32 = arith.constant 0 : index
    %52 = vector.load %arg8[%c0_30, %c0_31, %c0_32] : memref<1x8x128xf32, #tpu.memory_space<vmem>>, vector<1x8x128xf32>
    tpu.vector_store %arg8[%c0_30, %c0_31, %c0_32], %51 {strides = array<i32>} : memref<1x8x128xf32, #tpu.memory_space<vmem>>, vector<1x8x128xf32>,
    return
  }
  func.func @transform_0(%arg0: i32) -> (i32, i32, i32) {
    %c0_i32 = arith.constant 0 : i32
    %c0_i32_0 = arith.constant 0 : i32
    %c0_i32_1 = arith.constant 0 : i32
    return %arg0, %c0_i32, %c0_i32_0 : i32, i32, i32
  }
  func.func @transform_1(%arg0: i32) -> (i32, i32, i32) {
    %c0_i32 = arith.constant 0 : i32
    %c0_i32_0 = arith.constant 0 : i32
    %c0_i32_1 = arith.constant 0 : i32
    return %arg0, %c0_i32, %c0_i32_0 : i32, i32, i32
  }
  func.func @transform_2(%arg0: i32) -> (i32, i32, i32) {
    %c0_i32 = arith.constant 0 : i32
    %c0_i32_0 = arith.constant 0 : i32
    %c0_i32_1 = arith.constant 0 : i32
    return %arg0, %c0_i32, %c0_i32_0 : i32, i32, i32
  }
  func.func @transform_3(%arg0: i32) -> (i32, i32) {
    %c0_i32 = arith.constant 0 : i32
    %c0_i32_0 = arith.constant 0 : i32
    %c0_i32_1 = arith.constant 0 : i32
    return %c0_i32, %c0_i32_0 : i32, i32
  }
  func.func @transform_4(%arg0: i32) -> (i32, i32) {
    %c0_i32 = arith.constant 0 : i32
    %c0_i32_0 = arith.constant 0 : i32
    %c0_i32_1 = arith.constant 0 : i32
    return %c0_i32, %c0_i32_0 : i32, i32
  }
  func.func @transform_5(%arg0: i32) -> (i32, i32) {
    %c0_i32 = arith.constant 0 : i32
    %c0_i32_0 = arith.constant 0 : i32
    %c0_i32_1 = arith.constant 0 : i32
    return %c0_i32, %c0_i32_0 : i32, i32
  }
  func.func @transform_6(%arg0: i32) -> (i32, i32) {
    %c0_i32 = arith.constant 0 : i32
    %c0_i32_0 = arith.constant 0 : i32
    %c0_i32_1 = arith.constant 0 : i32
    return %c0_i32, %c0_i32_0 : i32, i32
  }
  func.func @transform_7(%arg0: i32) -> (i32, i32, i32) {
    %c0_i32 = arith.constant 0 : i32
    %c0_i32_0 = arith.constant 0 : i32
    %c0_i32_1 = arith.constant 0 : i32
    return %arg0, %c0_i32, %c0_i32_0 : i32, i32, i32
  }
  func.func @transform_8(%arg0: i32) -> (i32, i32, i32) {
    %c0_i32 = arith.constant 0 : i32
    %c0_i32_0 = arith.constant 0 : i32
    %c0_i32_1 = arith.constant 0 : i32
    return %arg0, %c0_i32, %c0_i32_0 : i32, i32, i32
  }
}

</mosaic_0001>

<bundles_post_ra>
// kernel: tpu_custom_call.1
= control target key start
LH: loop header
LB: loop body
LE: loop exit
PB: predicated region body
PF: predicated region fallthrough
CT: control target
= control target key end

     0   :  { %s2203_s0 = inlined_call_operand.hbm [shape: bf16[2,8,128], index: 0, kind: input, shape index: {}]   ;;  %s2204_s1 = inlined_call_operand.hbm [shape: bf16[2,8,128], index: 1, kind: input, shape index: {}]   ;;  %s2205_s2 = inlined_call_operand.hbm [shape: bf16[2,128,128], index: 2, kind: input, shape index: {}]   ;;  %s2206_s3 = inlined_call_operand.hbm [shape: bf16[128,128], index: 3, kind: input, shape index: {}]   ;;  %s2207_s4 = inlined_call_operand.hbm [shape: f32[1,128], index: 4, kind: input, shape index: {}]   ;;  %s2208_s5 = inlined_call_operand.hbm [shape: bf16[128,128], index: 5, kind: input, shape index: {}]   ;;  %s2209_s6 = inlined_call_operand.hbm [shape: f32[1,128], index: 6, kind: input, shape index: {}]   ;;  %s2210_s7 = inlined_call_operand.hbm [shape: f32[2,8,128], index: 7, kind: output, shape index: {0}]   ;;  %s2211_s8 = inlined_call_operand.hbm [shape: bf16[2,8,128], index: 8, kind: output, shape index: {1}]  }
   0x1   :  { %2233 = sst [smem:[#allocation28_spill]] %s2204_s1 }
   0x2   :  { %2234 = sst [smem:[#allocation29_spill]] %s2206_s3 }
   0x3   :  { %2235 = sst [smem:[#allocation30_spill]] %s2208_s5 }
   0x4   :  { %14 = vsyncpa [#allocation3], 0 }
   0x5   :  { %16 = vsyncpa [#allocation3 + $0x1], 0 }
   0x6   :  { %17 = vsyncpa [#allocation6], 0 }
   0x7   :  { %19 = vsyncpa [#allocation6 + $0x1], 0 }
   0x8   :  { %20 = vsyncpa [#allocation9], 0 }
   0x9   :  { %21 = vsyncpa [#allocation12], 0 }
   0xa   :  { %22 = vsyncpa [#allocation4], 0 }
   0xb   :  { %24 = vsyncpa [#allocation4 + $0x1], 0 }
   0xc   :  { %25 = vsyncpa [#allocation16], 0 }
   0xd   :  { %27 = vsyncpa [#allocation16 + $0x1], 0  ;;  %s1752_s27 = smov 0   ;;  %s1754_s28 = smov 0  }
   0xe   :  { %s1756_s29 = smov 0   ;;  %s1758_s30 = smov 0  }
   0xf LB: > { %2236 = sst [smem:[#allocation23_spill]] %s1680_s27  ;;  %s1694_s9 = smov [#allocation8]   ;;  %s1692_s30 = sphi %s1758_s30, %s2271_s30   ;;  %s1688_s29 = sphi %s1756_s29, %s2273_s29   ;;  %s1684_s28 = sphi %s1754_s28, %s2275_s28   ;;  %s1680_s27 = sphi %s1752_s27, %s2274_s27  }
  0x10   : > { %2237 = sst [smem:[#allocation24_spill]] %s1688_s29  ;;  %s264_s10 = sshll.u32 %s1694_s9, 4  ;;  %s1778_s10 = int_to_ptr.vmem [resolvable:$true] %s264_s10 }
  0x11   : > { %s1773_s11 = sadd.s32 4294967295, %s1692_s30   ;;  %p1072_p0 = scmp.ge.s32.totalorder %s1692_s30, 1 }
  0x12   : > { %p2219_p1 = scmp.eq.s32.totalorder %s1773_s11, 0  ;;  %p252_p2 = scmp.lt.s32.totalorder %s1692_s30, 3 }
  0x13   : > { %s1695_s13 = smov [#allocation11]   ;;  %s2240_s3 = sld [smem:[#allocation29_spill]] }
  0x14   : > { %p1780_p3 = pnand %p1072_p0, %p252_p2  ;;  %s288_s14 = sshll.u32 %s1695_s13, 4  ;;  %s1793_s14 = int_to_ptr.vmem [resolvable:$true] %s288_s14 }
  0x16   : > { %s2238_s12 = scalar_select %p1780_p3, 1, 0 }
  0x17   : > { %p1270_p5 = pneg %p1780_p3 }
  0x19   : > { %p1789_p6 = pnand %p1270_p5, %p2219_p1  ;;  %s1380_s18 = scalar_lea.hbm %s2240_s3, 1024 }
  0x1a   : > { %p1381_p7 = scmp.ne.s32.totalorder %s2240_s3, %s1380_s18  ;;  %p1387_p11 = scmp.lt.u32.totalorder %s1380_s18, %s2240_s3 }
  0x1b   : > { %s2239_s15 = scalar_select %p1789_p6, 1, 0 }
  0x1c   : > { %p1803_p8 = pneg %p1789_p6 }
  0x1e   : > { %s2241_s21 = scalar_select %p1803_p8, 1, 0 }
  0x1f   : > { %p1383_p9 = pnand %p1803_p8, %p1381_p7 }
  0x21   : > { %p1384_p10 = pneg %p1383_p9 }
  0x23   : > { %p1389_p12 = pnand %p1387_p11, %p1384_p10 }
  0x25   : > { %1392 = shalt.err (!%p1389_p12)
}
  0x26   : > { %s1393_s24 = scalar_lea.vmem %s1778_s10, 1024  ;;  %p1401_p5 = scmp.lt.s32.totalorder %s1778_s10, %s1778_s10 }
  0x27   : > { %p1394_p13 = scmp.ne.s32.totalorder %s1778_s10, %s1393_s24  ;;  %p1402_p4 = scmp.lt.s32.totalorder %s1393_s24, %s1393_s24 }
  0x29   : > { %p1396_p0 = pnand %p1394_p13, %p1803_p8  ;;  %p1403_p7 = por %p1402_p4, %p1401_p5 }
  0x2b   : > { %p1397_p2 = pneg %p1396_p0 }
  0x2d   : > { %p1404_p9 = pnand %p1403_p7, %p1397_p2 }
  0x2f   : > { %1407 = shalt.err (!%p1404_p9)
}
  0x30   : > { %s2212_s25 = smov 64   ;;  %s2213_s26 = smov 4  }
  0x31   : > { %1273 = dma.hbm_to_vmem [thread:$0]  (!%p1789_p6), %s2240_s3, 1024, %s1778_s10, [#allocation9], %s2212_s25, %s2212_s25, %s2213_s26  }
  0x32   : > { %s2242_s5 = sld [smem:[#allocation30_spill]] }
  0x38   : > { %s1408_s18 = scalar_lea.hbm %s2242_s5, 1024 }
  0x39   : > { %p1409_p4 = scmp.ne.s32.totalorder %s2242_s5, %s1408_s18  ;;  %p1415_p12 = scmp.lt.u32.totalorder %s1408_s18, %s2242_s5 }
  0x3b   : > { %p1411_p10 = pnand %p1409_p4, %p1803_p8 }
  0x3d   : > { %p1412_p11 = pneg %p1411_p10 }
  0x3f   : > { %p1417_p13 = pnand %p1415_p12, %p1412_p11 }
  0x41   : > { %1420 = shalt.err (!%p1417_p13)
}
  0x42   : > { %s1421_s10 = scalar_lea.vmem %s1793_s14, 1024  ;;  %p1429_p7 = scmp.lt.s32.totalorder %s1793_s14, %s1793_s14 }
  0x43   : > { %p1422_p0 = scmp.ne.s32.totalorder %s1793_s14, %s1421_s10  ;;  %p1430_p9 = scmp.lt.s32.totalorder %s1421_s10, %s1421_s10 }
  0x45   : > { %p1424_p2 = pnand %p1422_p0, %p1803_p8  ;;  %p1431_p4 = por %p1430_p9, %p1429_p7 }
  0x47   : > { %p1425_p5 = pneg %p1424_p2 }
  0x49   : > { %p1432_p10 = pnand %p1431_p4, %p1425_p5 }
  0x4b   : > { %1435 = shalt.err (!%p1432_p10)
}
  0x4c   : > { %1279 = dma.hbm_to_vmem [thread:$0]  (!%p1789_p6), %s2242_s5, 1024, %s1793_s14, [#allocation12], %s2212_s25, %s2212_s25, %s2213_s26  }
  0x4d   : > { %s1071_s13 = sadd.s32 4294967294, %s1692_s30   ;;  %s1855_s16 = sadd.s32 1, %s1692_s30  }
  0x4e   : > { %2243 = sst [smem:[#allocation25_spill]] %s1855_s16  ;;  %s37_s17 = ssub.s32 %s1692_s30, %s1855_s16 }
  0x4f   : > { %s40_s18 = sadd.s32 1, %s1688_s29  ;;  %p38_p11 = scmp.eq.s32.totalorder %s37_s17, 0 }
  0x50   : > { %p47_p12 = scmp.ne.s32.totalorder %s1688_s29, %s1684_s28  ;;  %p48_p13 = scmp.eq.s32.totalorder %s1692_s30, 0 }
  0x51   : > { %p53_p0 = scmp.ne.s32.totalorder %s1684_s28, %s1680_s27  ;;  %p213_p7 = scmp.eq.s32.totalorder %s1773_s11, 1 }
  0x52   : > { %s1866_s19 = scalar_select %p38_p11, %s1688_s29, %s40_s18  }
  0x53   : > { %p49_p2 = por %p48_p13, %p47_p12  ;;  %p1870_p5 = por %p2219_p1, %p53_p0 }
  0x54   : > { %2244 = sst [smem:[#allocation26_spill]] %s1866_s19  ;;  %p219_p9 = scmp.eq.s32.totalorder %s1071_s13, 1 }
  0x55   : > { %s2245_s20 = scalar_select %p1870_p5, 1, 0 }
  0x56   : > { %p1304_p4 = scmp.lt.s32.totalorder %s1692_s30, 2  ;;  %s1877_s14 = sand.u32 1, %s1688_s29  }
  0x57   : > { %p1879_p10 = por %p213_p7, %p47_p12  ;;  %p1883_p11 = por %p219_p9, %p53_p0 }
  0x58   : > { %s2217_s10 = sshll.u32 %s1877_s14, 2  ;;  %s2218_s24 = sshll.u32 %s1692_s30, 6 }
  0x59   : > { %s2246_s22 = scalar_select %p1879_p10, 1, 0 }
  0x5a   : > { %s2247_s23 = scalar_select %p1883_p11, 1, 0 }
  0x5b   : > { %p1889_p13 = pnand %p1304_p4, %p49_p2  ;;  %s331_s13 = sand.u32 1, %s1692_s30  }
  0x5c   : > { %2248 = sst [smem:[#allocation27_spill]] %s2247_s23  ;;  %s2250_s1 = sld [smem:[#allocation28_spill]] }
  0x5d   : > { %s2249_s9 = scalar_select %p1889_p13, 1, 0 }
  0x5e   : > { %s335_s26 = scalar_lea.vmem [#allocation5], %s2217_s10  ;;  %s1082_s5 = sshll.u32 %s1877_s14, 6 }
  0x5f   : > { %s342_s3 = sshll.u32 %s335_s26, 4  ;;  %s1906_s19 = scalar_lea.sflag [#allocation6], %s331_s13  ;;  %s1904_s3 = int_to_ptr.vmem [resolvable:$true] %s342_s3 }
  0x60   : > { %p1912_p0 = pneg %p1889_p13 }
  0x62   : > { %s1899_s25 = scalar_lea.hbm %s2250_s1, %s2218_s24  ;;  %s1441_s26 = scalar_lea.hbm %s2250_s1, 128 }
  0x63   : > { %s1436_s29 = scalar_lea.hbm %s1899_s25, 64  ;;  %p1442_p9 = scmp.lt.u32.totalorder %s1899_s25, %s2250_s1 }
  0x64   : > { %p1437_p12 = scmp.ne.s32.totalorder %s1899_s25, %s1436_s29  ;;  %p1443_p4 = scmp.lt.u32.totalorder %s1441_s26, %s1436_s29 }
  0x65   : > { %s2251_s16 = scalar_select %p1912_p0, 1, 0 }
  0x66   : > { %p1439_p2 = pnand %p1912_p0, %p1437_p12  ;;  %p1444_p1 = por %p1443_p4, %p1442_p9 }
  0x67   : > { %p1445_p11 = scmp.lt.u32.totalorder %s1436_s29, %s1899_s25 }
  0x68   : > { %p1440_p7 = pneg %p1439_p2 }
  0x69   : > { %p1446_p10 = por %p1445_p11, %p1444_p1 }
  0x6b   : > { %p1447_p5 = pnand %p1446_p10, %p1440_p7 }
  0x6d   : > { %1450 = shalt.err (!%p1447_p5)
}
  0x6e   : > { %s1451_s13 = scalar_lea.vmem %s1904_s3, 64  ;;  %s1698_s17 = smov [#allocation5]  }
  0x6f   : > { %p1452_p12 = scmp.ne.s32.totalorder %s1904_s3, %s1451_s13  ;;  %s1456_s18 = sshll.u32 %s1698_s17, 4  ;;  %s1457_s18 = int_to_ptr.vmem [resolvable:$false] %s1456_s18 }
  0x70   : > { %s1458_s10 = scalar_lea.vmem %s1457_s18, 128  ;;  %p1459_p6 = scmp.lt.s32.totalorder %s1904_s3, %s1457_s18 }
  0x71   : > { %p1454_p2 = pnand %p1452_p12, %p1912_p0  ;;  %p1460_p8 = scmp.lt.s32.totalorder %s1458_s10, %s1451_s13 }
  0x73   : > { %p1455_p3 = pneg %p1454_p2  ;;  %p1461_p9 = por %p1460_p8, %p1459_p6 }
  0x75   : > { %p1462_p4 = pnand %p1461_p9, %p1455_p3 }
  0x77   : > { %1465 = shalt.err (!%p1462_p4)
}
  0x78   : > { %1289 = dma.hbm_to_vmem [thread:$0]  (!%p1889_p13), %s1899_s25, 64, %s1904_s3, %s1906_s19  }
  0x79   : > { %s353_s29 = scalar_lea.vmem [#allocation7], %s1082_s5  ;;  %s1699_s26 = smov [#allocation10]  }
  0x7a   : > { %s360_s24 = sshll.u32 %s353_s29, 4  ;;  %s278_s17 = sshll.u32 %s1699_s26, 4  ;;  %s1938_s24 = int_to_ptr.vmem [resolvable:$true] %s360_s24  ;;  %s279_s17 = int_to_ptr.vmem [resolvable:$true] %s278_s17 }
  0x7b   : > { %s1466_s10 = scalar_lea.hbm %s2207_s4, 16  ;;  %p2252_p3 = scmp.ne.s32.totalorder %s2241_s21, 0 }
  0x7c   : > { %p1467_p1 = scmp.ne.s32.totalorder %s2207_s4, %s1466_s10  ;;  %p1473_p5 = scmp.lt.u32.totalorder %s1466_s10, %s2207_s4 }
  0x7e   : > { %p1469_p6 = pnand %p1467_p1, %p2252_p3 }
  0x80   : > { %p1470_p8 = pneg %p1469_p6 }
  0x82   : > { %p1475_p10 = pnand %p1473_p5, %p1470_p8 }
  0x84   : > { %1478 = shalt.err (!%p1475_p10)
}
  0x85   : > { %s1479_s5 = scalar_lea.vmem %s279_s17, 16  ;;  %s1486_s29 = scalar_lea.vmem %s279_s17, 32 }
  0x86   : > { %p1480_p11 = scmp.ne.s32.totalorder %s279_s17, %s1479_s5  ;;  %p1487_p2 = scmp.lt.s32.totalorder %s279_s17, %s279_s17 }
  0x87   : > { %p1488_p9 = scmp.lt.s32.totalorder %s1486_s29, %s1479_s5 }
  0x88   : > { %p1482_p7 = pnand %p1480_p11, %p2252_p3 }
  0x89   : > { %p1489_p4 = por %p1488_p9, %p1487_p2 }
  0x8a   : > { %p1483_p12 = pneg %p1482_p7 }
  0x8c   : > { %p1490_p13 = pnand %p1489_p4, %p1483_p12 }
  0x8e   : > { %1493 = shalt.err (!%p1490_p13)
}
  0x8f   : > { %p2253_p1 = scmp.ne.s32.totalorder %s2239_s15, 0  ;;  %s1700_s26 = smov [#allocation13]  }
  0x90   : > { %s302_s13 = sshll.u32 %s1700_s26, 4  ;;  %s1494_s3 = scalar_lea.hbm %s2209_s6, 16  ;;  %s303_s13 = int_to_ptr.vmem [resolvable:$true] %s302_s13 }
  0x91   : > { %1276 = dma.hbm_to_vmem [thread:$0]  (!%p2253_p1), %s2207_s4, 16, %s279_s17, [#allocation9]  }
  0x92   : > { %p1495_p6 = scmp.ne.s32.totalorder %s2209_s6, %s1494_s3  ;;  %p1501_p5 = scmp.lt.u32.totalorder %s1494_s3, %s2209_s6 }
  0x94   : > { %p1497_p13 = pnand %p1495_p6, %p2252_p3 }
  0x96   : > { %p1498_p8 = pneg %p1497_p13 }
  0x98   : > { %p1503_p10 = pnand %p1501_p5, %p1498_p8 }
  0x9a   : > { %1506 = shalt.err (!%p1503_p10)
}
  0x9b   : > { %s1507_s17 = scalar_lea.vmem %s303_s13, 16  ;;  %s1514_s1 = scalar_lea.vmem %s303_s13, 32 }
  0x9c   : > { %p1508_p11 = scmp.ne.s32.totalorder %s303_s13, %s1507_s17  ;;  %p1515_p2 = scmp.lt.s32.totalorder %s303_s13, %s303_s13 }
  0x9d   : > { %p1516_p9 = scmp.lt.s32.totalorder %s1514_s1, %s1507_s17 }
  0x9e   : > { %p1510_p7 = pnand %p1508_p11, %p2252_p3 }
  0x9f   : > { %p1517_p4 = por %p1516_p9, %p1515_p2 }
  0xa0   : > { %p1511_p12 = pneg %p1510_p7 }
  0xa2   : > { %p1518_p0 = pnand %p1517_p4, %p1511_p12 }
  0xa4   : > { %1521 = shalt.err (!%p1518_p0)
}
  0xa5   : > { %1282 = dma.hbm_to_vmem [thread:$0]  (!%p2253_p1), %s2209_s6, 16, %s303_s13, [#allocation12]  }
  0xa6   : > { %s2254_s21 = sshll.u32 %s1692_s30, 6  ;;  %s2255_s3 = sshll.u32 %s1877_s14, 2 }
  0xa7   : > { %s1981_s10 = scalar_lea.hbm %s2203_s0, %s2254_s21  ;;  %s317_s15 = scalar_lea.vmem [#allocation2], %s2255_s3 }
  0xa8   : > { %s324_s25 = sshll.u32 %s317_s15, 4  ;;  %s1127_s5 = sshll.u32 %s1692_s30, 10  ;;  %s1985_s25 = int_to_ptr.vmem [resolvable:$true] %s324_s25 }
  0xa9   : > { %s314_s29 = scalar_lea.sflag [#allocation3], %s1877_s14  ;;  %s1522_s17 = scalar_lea.hbm %s1981_s10, 64 }
  0xaa   : > { %p1523_p0 = scmp.ne.s32.totalorder %s1981_s10, %s1522_s17  ;;  %p2256_p3 = scmp.ne.s32.totalorder %s2251_s16, 0 }
  0xab   : > { %s1527_s27 = scalar_lea.hbm %s2203_s0, 128  ;;  %p1528_p13 = scmp.lt.u32.totalorder %s1981_s10, %s2203_s0 }
  0xac   : > { %p1525_p1 = pnand %p1523_p0, %p2256_p3  ;;  %p1529_p8 = scmp.lt.u32.totalorder %s1527_s27, %s1522_s17 }
  0xad   : > { %p1531_p10 = scmp.lt.u32.totalorder %s1522_s17, %s1981_s10 }
  0xae   : > { %p1526_p6 = pneg %p1525_p1  ;;  %p1530_p5 = por %p1529_p8, %p1528_p13 }
  0xb0   : > { %p1532_p11 = por %p1531_p10, %p1530_p5 }
  0xb2   : > { %p1533_p7 = pnand %p1532_p11, %p1526_p6 }
  0xb4   : > { %1536 = shalt.err (!%p1533_p7)
}
  0xb5   : > { %s1537_s14 = scalar_lea.vmem %s1985_s25, 64  ;;  %s1701_s26 = smov [#allocation2]  }
  0xb6   : > { %p1538_p12 = scmp.ne.s32.totalorder %s1985_s25, %s1537_s14  ;;  %s1542_s18 = sshll.u32 %s1701_s26, 4  ;;  %s1543_s18 = int_to_ptr.vmem [resolvable:$false] %s1542_s18 }
  0xb7   : > { %s1544_s3 = scalar_lea.vmem %s1543_s18, 128  ;;  %p1545_p4 = scmp.lt.s32.totalorder %s1985_s25, %s1543_s18 }
  0xb8   : > { %p1540_p2 = pnand %p1538_p12, %p2256_p3  ;;  %p1546_p0 = scmp.lt.s32.totalorder %s1544_s3, %s1537_s14 }
  0xba   : > { %p1541_p9 = pneg %p1540_p2  ;;  %p1547_p1 = por %p1546_p0, %p1545_p4 }
  0xbc   : > { %p1548_p13 = pnand %p1547_p1, %p1541_p9 }
  0xbe   : > { %1551 = shalt.err (!%p1548_p13)
}
  0xbf   : > { %p2257_p6 = scmp.ne.s32.totalorder %s2249_s9, 0  ;;  %s2015_s13 = scalar_lea.hbm %s2205_s2, %s1127_s5 }
  0xc0   : > { %s1552_s1 = scalar_lea.hbm %s2015_s13, 1024  ;;  %s1557_s21 = scalar_lea.hbm %s2205_s2, 2048 }
  0xc1   : > { %1286 = dma.hbm_to_vmem [thread:$0]  (!%p2257_p6), %s1981_s10, 64, %s1985_s25, %s314_s29  }
  0xc2   : > { %p1553_p8 = scmp.ne.s32.totalorder %s2015_s13, %s1552_s1  ;;  %p1558_p11 = scmp.lt.u32.totalorder %s2015_s13, %s2205_s2 }
  0xc3   : > { %p1559_p7 = scmp.lt.u32.totalorder %s1557_s21, %s1552_s1  ;;  %p1561_p2 = scmp.lt.u32.totalorder %s1552_s1, %s2015_s13 }
  0xc4   : > { %p1555_p5 = pnand %p1553_p8, %p2256_p3 }
  0xc5   : > { %p1560_p12 = por %p1559_p7, %p1558_p11 }
  0xc6   : > { %p1556_p10 = pneg %p1555_p5 }
  0xc7   : > { %p1562_p9 = por %p1561_p2, %p1560_p12 }
  0xc9   : > { %p1563_p4 = pnand %p1562_p9, %p1556_p10 }
  0xcb   : > { %1566 = shalt.err (!%p1563_p4)
}
  0xcc   : > { %s1567_s5 = scalar_lea.vmem %s1938_s24, 1024  ;;  %s1702_s29 = smov [#allocation7]  }
  0xcd   : > { %p1568_p0 = scmp.ne.s32.totalorder %s1938_s24, %s1567_s5  ;;  %s1572_s14 = sshll.u32 %s1702_s29, 4  ;;  %s1573_s14 = int_to_ptr.vmem [resolvable:$false] %s1572_s14 }
  0xce   : > { %s1574_s26 = scalar_lea.vmem %s1573_s14, 2048  ;;  %p1575_p8 = scmp.lt.s32.totalorder %s1938_s24, %s1573_s14 }
  0xcf   : > { %p1570_p1 = pnand %p1568_p0, %p2256_p3  ;;  %p1576_p5 = scmp.lt.s32.totalorder %s1574_s26, %s1567_s5 }
  0xd1   : > { %p1571_p13 = pneg %p1570_p1  ;;  %p1577_p11 = por %p1576_p5, %p1575_p8 }
  0xd3   : > { %p1578_p7 = pnand %p1577_p11, %p1571_p13 }
  0xd5   : > { %1581 = shalt.err (!%p1578_p7)
}
  0xd6   : > { %s2258_s18 = smov 4   ;;  %s2259_s3 = smov 64  }
  0xd7   : > { %1292 = dma.hbm_to_vmem [thread:$0]  (!%p2257_p6), %s2015_s13, 1024, %s1938_s24, %s1906_s19, %s2259_s3, %s2259_s3, %s2258_s18  }
  0xd8   : > { %p2260_p3 = scmp.ne.s32.totalorder %s2238_s12, 0 }
  0xd9   : > { %s2045_s16 = sand.u32 (!%p2260_p3), 1, %s1684_s28   ;;  %p2261_p10 = scmp.ne.s32.totalorder (!%p2260_p3), %s2245_s20, 0 }
  0xda   : > { %372 = sbr.rel (%p2260_p3) target bundleno = 1467 (0x5bb), region = 48  ;;  %s2048_s15 = sshll.u32 (!%p2260_p3), %s2045_s16, 2 }
  0xdb   : > { %s375_s9 = scalar_lea.sflag (!%p2260_p3), [#allocation3], %s2045_s16  ;;  %s378_s17 = scalar_lea.vmem (!%p2260_p3), [#allocation2], %s2048_s15 }
  0xe1   : > { %1655 = dma.done.wait (%p2261_p10), %s375_s9, 64  }
  0xe2   : > { %1657 = vsyncadd (%p2261_p10), %s375_s9, 4294967232  ;;  %s383_s12 = sand.u32 1, %s1773_s11   ;;  %s387_s24 = scalar_lea.vmem [#allocation5], %s2048_s15 }
  0xe3   : > { %s384_s19 = scalar_lea.sflag [#allocation6], %s383_s12 }
  0xe4   : > { %1659 = dma.done.wait (%p2261_p10), %s384_s19, 1088  }
  0xe5   : > { %1661 = vsyncadd (%p2261_p10), %s384_s19, 4294966208  ;;  %s1088_s13 = sshll.u32 %s2045_s16, 6  ;;  %p2262_p6 = scmp.eq.s32.totalorder %s1773_s11, 0 }
  0xe6   : > { %s2063_s1 = scalar_lea.vmem [#allocation7], %s1088_s13 }
  0xe7   : > { %1663 = dma.done.wait (%p2262_p6), [#allocation9], 1040   ;;  %p2263_p12 = pmov %p2262_p6 }
  0xe8   : > { %p2264_p2 = pmov %p2262_p6 }
  0xe9   : > { %1665 = vsyncadd (%p2263_p12), [#allocation9], 4294966256 }
  0xea   : > { %1667 = dma.done.wait (%p2264_p2), [#allocation12], 1040   ;;  %p2265_p9 = pmov %p2264_p2 }
  0xeb   : > { %v1703_v0 = vmov 0.0   ;;  %vm1704_vm0 = vmmov 0   ;;  %v1350_v1 = vld [vmem:[#allocation8] sm:$0xff]   ;;  %v1351_v2 = vld [vmem:[#allocation8 + $0x8] sm:$0xff]   ;;  %v1352_v3 = vld [vmem:[#allocation8 + $0x10] sm:$0xff]   ;;  %s459_s20 = scalar_lea.vmem [#allocation15], %s2048_s15 }
  0xec   : > { %1669 = vsyncadd (%p2265_p9), [#allocation12], 4294966256  ;;  %1164 = vmatprep.subr.bf16.mxu0 %v1703_v0  ;;  %1180 = vmatprep.mubr.msk.bf16.mxu0 %vm1704_vm0, %v1703_v0  ;;  %v1358_v4 = vld [vmem:[%s2063_s1] sm:$0xff]   ;;  %v1353_v5 = vld [vmem:[#allocation8 + $0x18] sm:$0xff]   ;;  %s1124_s27 = sshll.u32 %s1773_s11, 6  ;;  %s888_s23 = sshll.u32 %s459_s20, 4  ;;  %s889_s23 = int_to_ptr.vmem [resolvable:$true] %s888_s23 }
  0xed   : > { %1184 = vmatprep.subr.bf16.mxu1 %v1703_v0  ;;  %1200 = vmatprep.mubr.msk.bf16.mxu1 %vm1704_vm0, %v1703_v0  ;;  %v1359_v6 = vld [vmem:[%s2063_s1 + $0x8] sm:$0xff]   ;;  %v1354_v7 = vld [vmem:[#allocation8 + $0x20] sm:$0xff]   ;;  %v1360_v8 = vld [vmem:[%s2063_s1 + $0x10] sm:$0xff]   ;;  %s2133_s25 = scalar_lea.hbm %s2211_s8, %s1124_s27  ;;  %s862_s5 = scalar_lea.sflag [#allocation16], %s2045_s16 }
  0xee   : > { %1165 = vmatpush3.bf16.msra.mxu0 %v1350_v1  ;;  %1185 = vmatpush3.bf16.msra.mxu1 %v1358_v4  ;;  %v1355_v9 = vld [vmem:[#allocation8 + $0x28] sm:$0xff]   ;;  %v1361_v10 = vld [vmem:[%s2063_s1 + $0x18] sm:$0xff]   ;;  %v1356_v11 = vld [vmem:[#allocation8 + $0x30] sm:$0xff]   ;;  %s1582_s29 = scalar_lea.vmem %s889_s23, 64  ;;  %p2266_p0 = scmp.ne.s32.totalorder %s2246_s22, 0 }
  0xef   : > { %1166 = vmatprep.subr.bf16.mxu0 %v1703_v0  ;;  %1186 = vmatprep.subr.bf16.mxu1 %v1703_v0  ;;  %v1362_v12 = vld [vmem:[%s2063_s1 + $0x20] sm:$0xff]   ;;  %v1357_v13 = vld [vmem:[#allocation8 + $0x38] sm:$0xff]   ;;  %v1363_v14 = vld [vmem:[%s2063_s1 + $0x28] sm:$0xff]   ;;  %p1583_p4 = scmp.ne.s32.totalorder %s889_s23, %s1582_s29  ;;  %s1705_s14 = smov [#allocation15]  }
  0xf0   : > { %v2099_v15 = vld [vmem:[%s378_s17] sm:$0xf]  ;;  %v1365_v17 = vld [vmem:[%s2063_s1 + $0x38] sm:$0xff]   ;;  %v1095_v19 = vld [vmem:[#allocation10] ss:$0 sm:$0xff]  ;;  %s1586_s26 = sshll.u32 %s1705_s14, 4  ;;  %s1587_s26 = int_to_ptr.vmem [resolvable:$false] %s1586_s26 }
  0xf1   : > { %v1364_v16 = vld [vmem:[%s2063_s1 + $0x30] sm:$0xff]   ;;  %v462_v18 = vld [vmem:[%s387_s24] sm:$0xf]  ;;  %v1366_v37 = vld [vmem:[#allocation11] sm:$0xff]   ;;  %p1584_p1 = pnand %p1583_p4, %p2266_p0  ;;  %s1588_s18 = scalar_lea.vmem %s1587_s26, 128 }
  0xf2   : > { %1167 = vmatpush3.bf16.msra.mxu0 %v1351_v2  ;;  %1187 = vmatpush3.bf16.msra.mxu1 %v1359_v6  ;;  %v574_v20 = vunpack.c.l.bf16 %v462_v18  ;;  %v1367_v38 = vld [vmem:[#allocation11 + $0x8] sm:$0xff]   ;;  %v1368_v39 = vld [vmem:[#allocation11 + $0x10] sm:$0xff]   ;;  %v1369_v40 = vld [vmem:[#allocation11 + $0x18] sm:$0xff]   ;;  %p1589_p8 = scmp.lt.s32.totalorder %s889_s23, %s1587_s26  ;;  %p1590_p5 = scmp.lt.s32.totalorder %s1588_s18, %s1582_s29 }
  0xf3   : > { %1168 = vmatprep.subr.bf16.mxu0 %v1703_v0  ;;  %1188 = vmatprep.subr.bf16.mxu1 %v1703_v0  ;;  %v1370_v41 = vld [vmem:[#allocation11 + $0x20] sm:$0xff]   ;;  %v1371_v42 = vld [vmem:[#allocation11 + $0x28] sm:$0xff]   ;;  %v1372_v43 = vld [vmem:[#allocation11 + $0x30] sm:$0xff]   ;;  %p1585_p13 = pneg %p1584_p1 }
  0xf4   : > { %v1373_v54 = vld [vmem:[#allocation11 + $0x38] sm:$0xff]   ;;  %p1591_p11 = por %p1590_p5, %p1589_p8 }
  0xf6   : > { %1169 = vmatpush3.bf16.msra.mxu0 %v1352_v3  ;;  %1189 = vmatpush3.bf16.msra.mxu1 %v1360_v8  ;;  %p1592_p7 = pnand %p1591_p11, %p1585_p13 }
  0xf7   : > { %1170 = vmatprep.subr.bf16.mxu0 %v1703_v0  ;;  %1190 = vmatprep.subr.bf16.mxu1 %v1703_v0 }
  0xfa   : > { %1171 = vmatpush3.bf16.msra.mxu0 %v1353_v5  ;;  %1191 = vmatpush3.bf16.msra.mxu1 %v1361_v10 }
  0xfb   : > { %1172 = vmatprep.subr.bf16.mxu0 %v1703_v0  ;;  %1192 = vmatprep.subr.bf16.mxu1 %v1703_v0 }
  0xfe   : > { %1173 = vmatpush3.bf16.msra.mxu0 %v1354_v7  ;;  %1193 = vmatpush3.bf16.msra.mxu1 %v1362_v12 }
  0xff   : > { %1174 = vmatprep.subr.bf16.mxu0 %v1703_v0  ;;  %1194 = vmatprep.subr.bf16.mxu1 %v1703_v0 }
 0x102   : > { %1175 = vmatpush3.bf16.msra.mxu0 %v1355_v9  ;;  %1195 = vmatpush3.bf16.msra.mxu1 %v1363_v14 }
 0x103   : > { %1176 = vmatprep.subr.bf16.mxu0 %v1703_v0  ;;  %1196 = vmatprep.subr.bf16.mxu1 %v1703_v0 }
 0x106   : > { %1177 = vmatpush3.bf16.msra.mxu0 %v1356_v11  ;;  %1197 = vmatpush3.bf16.msra.mxu1 %v1364_v16 }
 0x107   : > { %1178 = vmatprep.subr.bf16.mxu0 %v1703_v0  ;;  %1198 = vmatprep.subr.bf16.mxu1 %v1703_v0 }
 0x10a   : > { %1179 = vmatpush3.bf16.msra.mxu0 %v1357_v13  ;;  %1199 = vmatpush3.bf16.msra.mxu1 %v1365_v17 }
 0x10b   : > { %1204 = vmatprep.subr.bf16.mxu0 %v1703_v0  ;;  %1224 = vmatprep.subr.bf16.mxu1 %v1703_v0 }
 0x10d   : > { %1181 = vmatmul.mubr.bf16.vlgmr.msra.gmra.mrb[0].mxu0 %v2099_v15 }
 0x10e   : > { %1220 = vmatprep.mubr.msk.bf16.mxu0 %vm1704_vm0, %v1703_v0 }
 0x113   : > { %1205 = vmatpush3.bf16.xpose.msra.mxu0 %v1358_v4 }
 0x114   : > { %1206 = vmatprep.subr.bf16.mxu0 %v1703_v0 }
 0x11b   : > { %1207 = vmatpush3.bf16.xpose.msra.mxu0 %v1359_v6 }
 0x11c   : > { %1208 = vmatprep.subr.bf16.mxu0 %v1703_v0 }
 0x123   : > { %1209 = vmatpush3.bf16.xpose.msra.mxu0 %v1360_v8 }
 0x124   : > { %1210 = vmatprep.subr.bf16.mxu0 %v1703_v0 }
 0x12b   : > { %1211 = vmatpush3.bf16.xpose.msra.mxu0 %v1361_v10 }
 0x12c   : > { %1212 = vmatprep.subr.bf16.mxu0 %v1703_v0 }
 0x133   : > { %1213 = vmatpush3.bf16.xpose.msra.mxu0 %v1362_v12 }
 0x134   : > { %1214 = vmatprep.subr.bf16.mxu0 %v1703_v0 }
 0x13b   : > { %1215 = vmatpush3.bf16.xpose.msra.mxu0 %v1363_v14 }
 0x13c   : > { %1216 = vmatprep.subr.bf16.mxu0 %v1703_v0 }
 0x143   : > { %1217 = vmatpush3.bf16.xpose.msra.mxu0 %v1364_v16 }
 0x144   : > { %1218 = vmatprep.subr.bf16.mxu0 %v1703_v0 }
 0x14b   : > { %1219 = vmatpush3.bf16.xpose.msra.mxu0 %v1365_v17 }
 0x1e0   : > { %v568_v21 = vpop.f32.mrb[0].mxu0 }
 0x1e1   : > { %v569_v22 = vadd.f32 %v1095_v19, %v568_v21  ;;  %v1182_v23 = vpop.f32.mrb[1].mxu0 }
 0x1e2   : > { %v571_v24 = vpop.f32.mrb[2].mxu0 }
 0x1e3   : > { %v575_v25 = vadd.f32 %v574_v20, %v569_v22  ;;  %v1183_v26 = vpop.f32.mrb[3].mxu0 }
 0x1e5   : > { %v576_v27 = vmul.f32 0.70710677, %v575_v25 }
 0x1e7   : > { %v577_v28 = vpack.c.bf16 %v576_v27, %v576_v27 }
 0x1e9   : > { %1201 = vmatmul.mubr.bf16.vlgmr.msra.gmra.mrb[0].mxu1 %v577_v28 }
 0x1ea   : > { %1240 = vmatprep.mubr.msk.bf16.mxu1 %vm1704_vm0, %v1703_v0  ;;  %1225 = vmatpush3.bf16.msra.mxu1 %v1366_v37 }
 0x1eb   : > { %1226 = vmatprep.subr.bf16.mxu1 %v1703_v0 }
 0x1ee   : > { %1227 = vmatpush3.bf16.msra.mxu1 %v1367_v38 }
 0x1ef   : > { %1228 = vmatprep.subr.bf16.mxu1 %v1703_v0 }
 0x1f2   : > { %1229 = vmatpush3.bf16.msra.mxu1 %v1368_v39 }
 0x1f3   : > { %1230 = vmatprep.subr.bf16.mxu1 %v1703_v0 }
 0x1f6   : > { %1231 = vmatpush3.bf16.msra.mxu1 %v1369_v40 }
 0x1f7   : > { %1232 = vmatprep.subr.bf16.mxu1 %v1703_v0 }
 0x1fa   : > { %1233 = vmatpush3.bf16.msra.mxu1 %v1370_v41 }
 0x1fb   : > { %1234 = vmatprep.subr.bf16.mxu1 %v1703_v0 }
 0x1fe   : > { %1235 = vmatpush3.bf16.msra.mxu1 %v1371_v42 }
 0x1ff   : > { %1236 = vmatprep.subr.bf16.mxu1 %v1703_v0 }
 0x202   : > { %1237 = vmatpush3.bf16.msra.mxu1 %v1372_v43 }
 0x203   : > { %1238 = vmatprep.subr.bf16.mxu1 %v1703_v0 }
 0x206   : > { %1239 = vmatpush3.bf16.msra.mxu1 %v1373_v54 }
 0x2bc   : > { %v676_v29 = vpop.f32.mrb[0].mxu1 }
 0x2bd   : > { %682 = vmax.xlane.f32.xlu0 %v676_v29  ;;  %v1202_v30 = vpop.f32.mrb[1].mxu1 }
 0x2be   : > { %v679_v31 = vpop.f32.mrb[2].mxu1 }
 0x2bf   : > { %v1203_v32 = vpop.f32.mrb[3].mxu1 }
 0x34a   : > { %v683_v33 = vpop.xlane.xlu0 %682 }
 0x34b   : > { %v684_v34 = vsub.f32 %v676_v29, %v683_v33  ;;  %v689_v44 = vsub.f32 0.0, %v683_v33 }
 0x34d   : > { %v685_v35 = vmul.f32 1.442695, %v684_v34  ;;  %v690_v45 = vmul.f32 1.442695, %v689_v44 }
 0x34f   : > { %1374 = vpow2.f32 %v685_v35 }
 0x350   : > { %1376 = vpow2.f32 %v690_v45 }
 0x359   : > { %v1375_v36 = vpop.eup %1374 }
 0x35a   : > { %687 = vadd.xlane.f32.xlu0 %v1375_v36  ;;  %v1377_v46 = vpop.eup %1376 }
 0x35b   : > { %v692_v47 = vmul.f32 112.0, %v1377_v46 }
 0x3e7   : > { %v688_v48 = vpop.xlane.xlu0 %687 }
 0x3e8   : > { %v693_v49 = vsub.f32 %v688_v48, %v692_v47 }
 0x3ea   : > { %v694_v50 = vmax.f32 %v693_v49, 1e-30 }
 0x3ec   : > { %1378 = vrcp.f32 %v694_v50 }
 0x3f6   : > { %v1379_v51 = vpop.eup %1378 }
 0x3f7   : > { %v696_v52 = vmul.f32 %v1379_v51, %v1375_v36 }
 0x3f9   : > { %v697_v53 = vpack.c.bf16 %v696_v52, %v696_v52 }
 0x3fb   : > { %1221 = vmatmul.mubr.bf16.vlgmr.msra.gmra.mrb[4].mxu0 %v697_v53  ;;  %698 = vst [vmem:[%s459_s20] sm:$0xf] %v697_v53 }
 0x4ce   : > { %v733_v55 = vpop.f32.mrb[4].mxu0 }
 0x4cf   : > { %v739_v56 = vmul.f32 4.0, %v733_v55  ;;  %v1222_v57 = vpop.f32.mrb[5].mxu0 }
 0x4d0   : > { %v736_v58 = vpop.f32.mrb[6].mxu0 }
 0x4d1   : > { %v740_v59 = vpack.c.bf16 %v739_v56, %v739_v56  ;;  %v1223_v60 = vpop.f32.mrb[7].mxu0 }
 0x4d3   : > { %1241 = vmatmul.mubr.bf16.vlgmr.msra.gmra.mrb[4].mxu1 %v740_v59 }
 0x4d4   : > { %1595 = shalt.err (!%p1592_p7)
}
 0x4d5   : > { %s1596_s3 = scalar_lea.hbm %s2133_s25, 64  ;;  %s1600_s17 = scalar_lea.hbm %s2211_s8, 128 }
 0x4d6   : > { %p1597_p3 = scmp.ne.s32.totalorder %s2133_s25, %s1596_s3  ;;  %p1601_p12 = scmp.lt.u32.totalorder %s2133_s25, %s2211_s8 }
 0x4d7   : > { %p1602_p2 = scmp.lt.u32.totalorder %s1600_s17, %s1596_s3  ;;  %p1604_p4 = scmp.lt.u32.totalorder %s1596_s3, %s2133_s25 }
 0x4d8   : > { %p1598_p10 = pnand %p1597_p3, %p2266_p0 }
 0x4d9   : > { %p1603_p9 = por %p1602_p2, %p1601_p12 }
 0x4da   : > { %p1599_p6 = pneg %p1598_p10 }
 0x4db   : > { %p1605_p1 = por %p1604_p4, %p1603_p9 }
 0x4dd   : > { %p1606_p13 = pnand %p1605_p1, %p1599_p6 }
 0x4df   : > { %1609 = shalt.err (!%p1606_p13)
}
 0x4e0   : > { %1267 = dma.vmem_to_hbm [thread:$0]  (%p2266_p0), %s889_s23, 64, %s2133_s25, %s862_s5   ;;  %v1112_v61 = vld [vmem:[#allocation13] ss:$0 sm:$0xff]  ;;  %v852_v62 = vunpack.c.l.bf16 %v2099_v15 }
 0x4e1   : > { %s1093_s24 = sshll.u32 %s2045_s16, 3  ;;  %s1123_s13 = sshll.u32 %s1773_s11, 7 }
 0x4e2   : > { %s452_s1 = scalar_lea.vmem [#allocation14], %s1093_s24  ;;  %s2159_s23 = scalar_lea.hbm %s2210_s7, %s1123_s13 }
 0x4e3   : > { %s875_s20 = sshll.u32 %s452_s1, 4  ;;  %s857_s10 = scalar_lea.sflag [#allocation4], %s2045_s16  ;;  %s2161_s20 = int_to_ptr.vmem [resolvable:$true] %s875_s20 }
 0x4e4   : > { %s1610_s25 = scalar_lea.vmem %s2161_s20, 128  ;;  %s1706_s11 = smov [#allocation14]  }
 0x4e5   : > { %p1611_p8 = scmp.ne.s32.totalorder %s2161_s20, %s1610_s25  ;;  %s1614_s5 = sshll.u32 %s1706_s11, 4  ;;  %s1615_s5 = int_to_ptr.vmem [resolvable:$false] %s1614_s5 }
 0x4e6   : > { %s1616_s29 = scalar_lea.vmem %s1615_s5, 256  ;;  %p1617_p7 = scmp.lt.s32.totalorder %s2161_s20, %s1615_s5 }
 0x4e7   : > { %p1612_p5 = pnand %p1611_p8, %p2266_p0  ;;  %p1618_p3 = scmp.lt.s32.totalorder %s1616_s29, %s1610_s25 }
 0x4e9   : > { %p1613_p11 = pneg %p1612_p5  ;;  %p1619_p10 = por %p1618_p3, %p1617_p7 }
 0x4eb   : > { %p1620_p6 = pnand %p1619_p10, %p1613_p11 }
 0x5a6   : > { %v846_v63 = vpop.f32.mrb[4].mxu1 }
 0x5a7   : > { %v847_v0 = vadd.f32 %v1112_v61, %v846_v63  ;;  %v1242_v1 = vpop.f32.mrb[5].mxu1 }
 0x5a8   : > { %v849_v2 = vpop.f32.mrb[6].mxu1 }
 0x5a9   : > { %v853_v3 = vadd.f32 %v852_v62, %v847_v0  ;;  %v1243_v4 = vpop.f32.mrb[7].mxu1 }
 0x5ab   : > { %v854_v5 = vmul.f32 0.70710677, %v853_v3 }
 0x5ad   : > { %855 = vst [vmem:[%s452_s1] sm:$0xff] %v854_v5 }
 0x5ae   : > { %1623 = shalt.err (!%p1620_p6)
}
 0x5af   : > { %s1624_s16 = scalar_lea.hbm %s2159_s23, 128  ;;  %s1628_s18 = scalar_lea.hbm %s2210_s7, 256 }
 0x5b0   : > { %p1625_p12 = scmp.ne.s32.totalorder %s2159_s23, %s1624_s16  ;;  %p1629_p4 = scmp.lt.u32.totalorder %s2159_s23, %s2210_s7 }
 0x5b1   : > { %p1630_p1 = scmp.lt.u32.totalorder %s1628_s18, %s1624_s16  ;;  %p1632_p8 = scmp.lt.u32.totalorder %s1624_s16, %s2159_s23 }
 0x5b2   : > { %p1626_p2 = pnand %p1625_p12, %p2266_p0 }
 0x5b3   : > { %p1631_p13 = por %p1630_p1, %p1629_p4 }
 0x5b4   : > { %p1627_p9 = pneg %p1626_p2 }
 0x5b5   : > { %p1633_p5 = por %p1632_p8, %p1631_p13 }
 0x5b7   : > { %p1634_p11 = pnand %p1633_p5, %p1627_p9 }
 0x5b9   : > { %1637 = shalt.err (!%p1634_p11)
}
 0x5ba   : > { %1266 = dma.vmem_to_hbm [thread:$0]  (%p2266_p0), %s2161_s20, 128, %s2159_s23, %s857_s10  }
 0x5bb PF: > { %s2267_s9 = sld [smem:[#allocation23_spill]]  ;;  %s2268_s17 = sld [smem:[#allocation27_spill]] }
 0x5bc   : > { %p2270_p3 = scmp.ge.s32.totalorder %s1692_s30, 2 }
 0x5c1   : > { %s900_s12 = sand.u32 1, %s2267_s9   ;;  %p2269_p7 = scmp.ne.s32.totalorder %s2268_s17, 0 }
 0x5c2   : > { %s901_s19 = scalar_lea.sflag [#allocation4], %s900_s12 }
 0x5c3   : > { %p1294_p10 = pnand %p2270_p3, %p2269_p7 }
 0x5c5   : > { %1671 = dma.done.wait (!%p1294_p10), %s901_s19, 128  }
 0x5c6   : > { %1673 = vsyncadd (!%p1294_p10), %s901_s19, 4294967168  ;;  %s910_s24 = scalar_lea.sflag [#allocation16], %s900_s12 }
 0x5c7   : > { %1675 = dma.done.wait (!%p1294_p10), %s910_s24, 64  }
 0x5c8   : > { %1677 = vsyncadd (!%p1294_p10), %s910_s24, 4294967232  ;;  %s2271_s30 = sld [smem:[#allocation25_spill]]  ;;  %s2272_s22 = sld [smem:[#allocation24_spill]] }
 0x5c9   : > { %s2273_s29 = sld [smem:[#allocation26_spill]]  ;;  %s2274_s27 = smov %s1684_s28 }
 0x5ce   : > { %p30_p0 = scmp.ge.s32.totalorder %s2271_s30, 4   ;;  %s2275_s28 = smov %s2272_s22 }
 0x5d0   :  { %32 = sbr.rel (!%p30_p0) target bundleno = 15 (0xf), region = 150 }
 0x5d7   :  { %915 = vsyncpa [#allocation3], 1 }
 0x5d8   :  { %917 = vsyncpa [#allocation3 + $0x1], 1 }
 0x5d9   :  { %918 = vsyncpa [#allocation6], 1 }
 0x5da   :  { %920 = vsyncpa [#allocation6 + $0x1], 1 }
 0x5db   :  { %921 = vsyncpa [#allocation9], 1 }
 0x5dc   :  { %922 = vsyncpa [#allocation12], 1 }
 0x5dd   :  { %923 = vsyncpa [#allocation4], 1 }
 0x5de   :  { %925 = vsyncpa [#allocation4 + $0x1], 1 }
 0x5df   :  { %926 = vsyncpa [#allocation16], 1 }
 0x5e0   :  { %928 = vsyncpa [#allocation16 + $0x1], 1 }

</bundles_post_ra>
